<compile_context>
chip_gen: v6e
topology: v6e:2x2x1
jax: 0.10.0
libtpu: 0.0.40
codegen_flags: <defaults>
</compile_context>

<pallas_src>
import functools

import jax
import jax.numpy as jnp
from jax.experimental import pallas as pl
from jax.experimental.pallas import tpu as pltpu


# ----------------------------- Pallas kernel ---------------------------------

def _deconv_stats_kernel(x_ref, w_ref, y_ref, sum_ref, sq_ref):
    """One pixel-tile step of the channel-major transposed-conv matmul.

    x_ref:   (1, Cin, TM)         f32   native-NCHW input slice
    w_ref:   (Cin, Ncol_pad)      f32   reshaped ConvTranspose2d weight (resident)
    y_ref:   (1, TM, Ncol_pad)    bf16  per-(pixel, cout*kh*kw) contributions
    sum_ref: (1, 1, 8, Ncol_pad)  f32   per-block partial column sums
    sq_ref:  (1, 1, 8, Ncol_pad)  f32   per-block partial column sum-of-squares
    """
    x = x_ref[0]                      # (Cin, TM)  f32
    w = w_ref[...]                    # (Cin, Ncol_pad) f32
    # y^T = x^T @ w : stream the big pixel axis, keep the weight slab stationary,
    # Ncol (>=128) on the lane axis so the y store is an unmasked full-lane vst.
    y = jax.lax.dot_general(x, w, (((0,), (0,)), ((), ())),
                            preferred_element_type=jnp.float32)   # (TM, Ncol_pad)
    y_ref[0] = y.astype(y_ref.dtype)
    # Fused BN statistics (exact f32, computed before the bf16 store).
    psum = jnp.sum(y, axis=0, keepdims=True)        # (1, Ncol_pad)
    psq = jnp.sum(y * y, axis=0, keepdims=True)     # (1, Ncol_pad)
    sum_ref[0, 0] = jnp.broadcast_to(psum, sum_ref.shape[2:])
    sq_ref[0, 0] = jnp.broadcast_to(psq, sq_ref.shape[2:])


# ----------------------------- tiling helpers ---------------------------------

def _round_up(v, m):
    return ((v + m - 1) // m) * m


def _vmem_limit_bytes():
    """Generation-aware VMEM limit: 3/4 of physical, 64 MiB (v7x) fallback."""
    try:
        cap = int(pltpu.get_tpu_info().vmem_capacity_bytes)
    except Exception:
        cap = 64 << 20
    return (cap * 3) // 4


def _pick_spatial_tile(hw, bytes_per_col, fixed_bytes, budget):
    """Largest tile that divides H*W, is a multiple of 128 lanes (or the whole
    row), and fits the double-buffered VMEM budget (weights included)."""
    cands = sorted({t for t in range(1, hw + 1)
                    if hw % t == 0 and (t % 128 == 0 or t == hw)}, reverse=True)
    for t in cands:
        if fixed_bytes + t * bytes_per_col <= budget:
            return t
    return cands[-1]


# --------------------------------- wrapper ------------------------------------

def upconv2d_forward(x, weight, conv_bias, gamma, beta, *,
                     stride=1, padding=0, eps=1e-5):
    """UpConv2d forward: ConvTranspose2d -> BatchNorm2d (batch stats) -> ReLU.

    NCHW in / NCHW out, matching PyTorch.  `conv_bias` is accepted for
    interface fidelity but cancels exactly against the batch mean in
    training-mode BatchNorm, so it never affects the returned tensor.
    """
    N, Cin, H, W = x.shape
    Cin_w, Cout, KH, KW = weight.shape
    assert Cin == Cin_w
    del conv_bias  # cancelled by the batch mean (see docstring)

    Ho = (H - 1) * stride - 2 * padding + KH
    Wo = (W - 1) * stride - 2 * padding + KW
    HW = H * W
    Ncol = Cout * KH * KW
    Ncol_pad = max(_round_up(Ncol, 128), 128)

    # Weight as a (Cin, Ncol) slab, zero-padded on the lane axis to >= 128.
    # Zero columns contribute zero to the fused statistics and are sliced off.
    w_mat = weight.astype(jnp.float32).reshape(Cin, Ncol)
    if Ncol_pad != Ncol:
        w_mat = jnp.pad(w_mat, ((0, 0), (0, Ncol_pad - Ncol)))

    # x consumed straight from NCHW: metadata-only reshape, no transpose/pad/cast.
    x_r = x.astype(jnp.float32).reshape(N, Cin, HW)

    vmem_limit = _vmem_limit_bytes()
    # Double-buffered footprint: resident weights + the two tiny stat blocks
    # are "fixed"; x column (f32) + y row (bf16) scale with the tile.
    fixed_bytes = 2 * (Cin * Ncol_pad * 4 + 2 * 8 * Ncol_pad * 4)
    bytes_per_col = 2 * (Cin * 4 + Ncol_pad * 2)
    TM = _pick_spatial_tile(HW, bytes_per_col, fixed_bytes, vmem_limit)
    Gs = HW // TM

    y_t, sum_part, sq_part = pl.pallas_call(
        _deconv_stats_kernel,
        grid=(N, Gs),
        in_specs=[
            pl.BlockSpec((1, Cin, TM), lambda n, s: (n, 0, s)),       # x slice
            pl.BlockSpec((Cin, Ncol_pad), lambda n, s: (0, 0)),       # resident w
        ],
        out_specs=(
            pl.BlockSpec((1, TM, Ncol_pad), lambda n, s: (n, s, 0)),  # y^T tile
            pl.BlockSpec((1, 1, 8, Ncol_pad), lambda n, s: (n, s, 0, 0)),
            pl.BlockSpec((1, 1, 8, Ncol_pad), lambda n, s: (n, s, 0, 0)),
        ),
        out_shape=(
            jax.ShapeDtypeStruct((N, HW, Ncol_pad), jnp.bfloat16),
            jax.ShapeDtypeStruct((N, Gs, 8, Ncol_pad), jnp.float32),
            jax.ShapeDtypeStruct((N, Gs, 8, Ncol_pad), jnp.float32),
        ),
        compiler_params=pltpu.CompilerParams(
            dimension_semantics=("parallel", "parallel"),
            vmem_limit_bytes=int(vmem_limit)),
    )(x_r, w_mat)

    # Tiny XLA reduce of the per-block partials (keeps the grid fully parallel).
    col_sum = sum_part[:, :, 0, :Ncol].sum(axis=(0, 1))   # (Ncol,)
    col_sq = sq_part[:, :, 0, :Ncol].sum(axis=(0, 1))     # (Ncol,)

    fast_path = (stride == KH == KW) and padding == 0

    if fast_path:
        # Non-overlapping windows: each (pixel, kh, kw) hits exactly one output
        # element, so channel statistics come straight from the fused sums.
        count = N * Ho * Wo
        ch_sum = col_sum.reshape(Cout, KH * KW).sum(axis=1)
        ch_sq = col_sq.reshape(Cout, KH * KW).sum(axis=1)
        mean = ch_sum / count
        var = jnp.maximum(ch_sq / count - mean * mean, 0.0)   # clamp: E[y^2]-E[y]^2
        scale = gamma * jax.lax.rsqrt(var + eps)
        shift = beta - mean * scale
        # Fused un-interleave + BN affine + ReLU: one read of the bf16
        # intermediate, one write of the f32 NCHW output (XLA fuses the
        # elementwise into the transpose's output write).
        y6 = y_t[:, :, :Ncol].reshape(N, H, W, Cout, KH, KW).astype(jnp.float32)
        z6 = jnp.maximum(y6 * scale[None, None, None, :, None, None]
                         + shift[None, None, None, :, None, None], 0.0)
        return z6.transpose(0, 3, 1, 4, 2, 5).reshape(N, Cout, Ho, Wo)

    # General stride/padding fallback (not used by the UNet module): XLA
    # scatter-add over overlapping windows; statistics from the cropped map.
    contrib = (y_t[:, :, :Ncol].astype(jnp.float32)
               .reshape(N, H, W, Cout, KH, KW)
               .transpose(4, 5, 0, 3, 1, 2))               # (KH, KW, N, Cout, H, W)
    Hf = (H - 1) * stride + KH
    Wf = (W - 1) * stride + KW
    y_full = jnp.zeros((N, Cout, Hf, Wf), jnp.float32)
    for kh in range(KH):
        for kw in range(KW):
            y_full = y_full.at[:, :,
                               kh:kh + (H - 1) * stride + 1:stride,
                               kw:kw + (W - 1) * stride + 1:stride
                               ].add(contrib[kh, kw])
    y0 = y_full[:, :, padding:padding + Ho, padding:padding + Wo]
    mean = jnp.mean(y0, axis=(0, 2, 3))
    var = jnp.maximum(jnp.var(y0, axis=(0, 2, 3)), 0.0)
    scale = gamma * jax.lax.rsqrt(var + eps)
    shift = beta - mean * scale
    return jnp.maximum(y0 * scale[None, :, None, None]
                       + shift[None, :, None, None], 0.0)


# ----------------------------- pure-JAX reference ------------------------------

def _reference(x, weight, conv_bias, gamma, beta, stride, padding, eps):
    N, Cin, H, W = x.shape
    _, Cout, KH, KW = weight.shape
    Hf = (H - 1) * stride + KH
    Wf = (W - 1) * stride + KW
    y = jnp.zeros((N, Cout, Hf, Wf), jnp.float32)
    for kh in range(KH):
        for kw in range(KW):
            c = jnp.einsum('nihw,io->nohw', x, weight[:, :, kh, kw],
                           precision=jax.lax.Precision.HIGHEST)
            y = y.at[:, :, kh:kh + (H - 1) * stride + 1:stride,
                           kw:kw + (W - 1) * stride + 1:stride].add(c)
    Ho = (H - 1) * stride - 2 * padding + KH
    Wo = (W - 1) * stride - 2 * padding + KW
    y = y[:, :, padding:padding + Ho, padding:padding + Wo]
    y = y + conv_bias[None, :, None, None]
    mean = y.mean(axis=(0, 2, 3), keepdims=True)
    var = y.var(axis=(0, 2, 3), keepdims=True)
    z = (y - mean) * jax.lax.rsqrt(var + eps)
    z = z * gamma[None, :, None, None] + beta[None, :, None, None]
    return jnp.maximum(z, 0.0)


# ----------------------------------- main --------------------------------------

if __name__ == "__main__":
    # Small shapes consistent with a UNet up-conv block:
    #   in_channels=4, out_channels=8, kernel_size=2, stride=2, padding=0
    N, Cin, H, W = 2, 4, 16, 16
    Cout, K, stride, padding = 8, 2, 2, 0

    key = jax.random.PRNGKey(0)
    kx, kw_, kb = jax.random.split(key, 3)

    x = jax.random.normal(kx, (N, Cin, H, W), jnp.float32)

    # Deterministic "PyTorch-like" init (uniform in +-1/sqrt(fan)).
    fan = Cin * K * K
    bound = 1.0 / float(fan) ** 0.5
    weight = jax.random.uniform(kw_, (Cin, Cout, K, K), jnp.float32,
                                -bound, bound)          # ConvTranspose2d weight
    conv_bias = jax.random.uniform(kb, (Cout,), jnp.float32, -bound, bound)
    gamma = jnp.ones((Cout,), jnp.float32)              # BatchNorm2d weight
    beta = jnp.zeros((Cout,), jnp.float32)              # BatchNorm2d bias

    fwd = jax.jit(functools.partial(upconv2d_forward,
                                    stride=stride, padding=padding))
    y = fwd(x, weight, conv_bias, gamma, beta)
    jax.block_until_ready(y)

    Ho = (H - 1) * stride - 2 * padding + K
    Wo = (W - 1) * stride - 2 * padding + K
    assert y.shape == (N, Cout, Ho, Wo), y.shape
    assert bool(jnp.all(jnp.isfinite(y)))
    assert bool(jnp.all(y >= 0.0))                      # ReLU

    y_ref = _reference(x, weight, conv_bias, gamma, beta, stride, padding, 1e-5)
    err = float(jnp.max(jnp.abs(y - y_ref)))
    # Tolerance covers the bf16 storage of the conv intermediate:
    # |delta z| <= max|z| * 2^-8 (~3.5 * 0.004 ~= 0.014 for these shapes).
    assert err < 3e-2, f"max abs err {err}"

    print("KERNEL_OK")
</pallas_src>

<mosaic_0001>
module attributes {stable_mosaic.version = 11 : i64} {
  func.func @_deconv_stats_kernel(%arg0: i32, %arg1: i32, %arg2: memref<1x4x256xf32, #tpu.memory_space<vmem>>, %arg3: memref<4x128xf32, #tpu.memory_space<vmem>>, %arg4: memref<1x256x128xbf16, #tpu.memory_space<vmem>>, %arg5: memref<1x1x8x128xf32, #tpu.memory_space<vmem>>, %arg6: memref<1x1x8x128xf32, #tpu.memory_space<vmem>>) attributes {dimension_semantics = [#tpu.dimension_semantics<parallel>, #tpu.dimension_semantics<parallel>], iteration_bounds = array<i64: 2, 1>, scalar_prefetch = 0 : i64, scratch_operands = 0 : i64, tpu.core_type = #tpu.core_type<tc>, window_params = [{transform_indices = @transform_0, window_bounds = array<i64: 1, 4, 256>}, {pipeline_mode = #tpu.pipeline_mode<synchronous>, transform_indices = @transform_1, window_bounds = array<i64: 4, 128>}, {transform_indices = @transform_2, window_bounds = array<i64: 1, 256, 128>}, {transform_indices = @transform_3, window_bounds = array<i64: 1, 1, 8, 128>}, {transform_indices = @transform_4, window_bounds = array<i64: 1, 1, 8, 128>}]} {
    %c0 = arith.constant 0 : index
    %c0_0 = arith.constant 0 : index
    %c0_1 = arith.constant 0 : index
    %0 = vector.load %arg2[%c0, %c0_0, %c0_1] : memref<1x4x256xf32, #tpu.memory_space<vmem>>, vector<1x4x256xf32>
    %1 = vector.shape_cast %0 : vector<1x4x256xf32> to vector<4x256xf32>
    %c0_2 = arith.constant 0 : index
    %c0_3 = arith.constant 0 : index
    %2 = vector.load %arg3[%c0_2, %c0_3] : memref<4x128xf32, #tpu.memory_space<vmem>>, vector<4x128xf32>
    %cst = arith.constant dense<0.000000e+00> : vector<256x128xf32>
    %3 = tpu.matmul %1, %2, %cst {dimension_numbers = #tpu.dot_dimension_numbers<[0], [0], [1], [1], [0, 1, 1, 1], [], []>} : vector<4x256xf32>, vector<4x128xf32>, vector<256x128xf32> -> vector<256x128xf32>
    %4 = arith.truncf %3 : vector<256x128xf32> to vector<256x128xbf16>
    %c0_4 = arith.constant 0 : index
    %c0_5 = arith.constant 0 : index
    %c0_6 = arith.constant 0 : index
    %5 = vector.load %arg4[%c0_4, %c0_5, %c0_6] : memref<1x256x128xbf16, #tpu.memory_space<vmem>>, vector<1x256x128xbf16>
    %6 = vector.shape_cast %5 : vector<1x256x128xbf16> to vector<256x128xbf16>
    %7 = vector.shape_cast %4 : vector<256x128xbf16> to vector<1x256x128xbf16>
    tpu.vector_store %arg4[%c0_4, %c0_5, %c0_6], %7 {strides = array<i32>} : memref<1x256x128xbf16, #tpu.memory_space<vmem>>, vector<1x256x128xbf16>,
    %cst_7 = arith.constant dense<0.000000e+00> : vector<128xf32>
    %8 = vector.multi_reduction <add>, %3, %cst_7 [0] : vector<256x128xf32> to vector<128xf32>
    %9 = vector.shape_cast %8 : vector<128xf32> to vector<1x128xf32>
    %10 = arith.mulf %3, %3 : vector<256x128xf32>
    %cst_8 = arith.constant dense<0.000000e+00> : vector<128xf32>
    %11 = vector.multi_reduction <add>, %10, %cst_8 [0] : vector<256x128xf32> to vector<128xf32>
    %12 = vector.shape_cast %11 : vector<128xf32> to vector<1x128xf32>
    %13 = vector.shape_cast %9 : vector<1x128xf32> to vector<1x128xf32>
    %14 = vector.broadcast %13 : vector<1x128xf32> to vector<8x128xf32>
    %c0_9 = arith.constant 0 : index
    %c0_10 = arith.constant 0 : index
    %c0_11 = arith.constant 0 : index
    %c0_12 = arith.constant 0 : index
    %15 = vector.load %arg5[%c0_9, %c0_10, %c0_11, %c0_12] : memref<1x1x8x128xf32, #tpu.memory_space<vmem>>, vector<1x1x8x128xf32>
    %16 = vector.shape_cast %15 : vector<1x1x8x128xf32> to vector<8x128xf32>
    %17 = vector.shape_cast %14 : vector<8x128xf32> to vector<1x1x8x128xf32>
    tpu.vector_store %arg5[%c0_9, %c0_10, %c0_11, %c0_12], %17 {strides = array<i32>} : memref<1x1x8x128xf32, #tpu.memory_space<vmem>>, vector<1x1x8x128xf32>,
    %18 = vector.shape_cast %12 : vector<1x128xf32> to vector<1x128xf32>
    %19 = vector.broadcast %18 : vector<1x128xf32> to vector<8x128xf32>
    %c0_13 = arith.constant 0 : index
    %c0_14 = arith.constant 0 : index
    %c0_15 = arith.constant 0 : index
    %c0_16 = arith.constant 0 : index
    %20 = vector.load %arg6[%c0_13, %c0_14, %c0_15, %c0_16] : memref<1x1x8x128xf32, #tpu.memory_space<vmem>>, vector<1x1x8x128xf32>
    %21 = vector.shape_cast %20 : vector<1x1x8x128xf32> to vector<8x128xf32>
    %22 = vector.shape_cast %19 : vector<8x128xf32> to vector<1x1x8x128xf32>
    tpu.vector_store %arg6[%c0_13, %c0_14, %c0_15, %c0_16], %22 {strides = array<i32>} : memref<1x1x8x128xf32, #tpu.memory_space<vmem>>, vector<1x1x8x128xf32>,
    return
  }
  func.func @transform_0(%arg0: i32, %arg1: i32) -> (i32, i32, i32) {
    %c0_i32 = arith.constant 0 : i32
    %c0_i32_0 = arith.constant 0 : i32
    return %arg0, %c0_i32, %arg1 : i32, i32, i32
  }
  func.func @transform_1(%arg0: i32, %arg1: i32) -> (i32, i32) {
    %c0_i32 = arith.constant 0 : i32
    %c0_i32_0 = arith.constant 0 : i32
    %c0_i32_1 = arith.constant 0 : i32
    return %c0_i32, %c0_i32_0 : i32, i32
  }
  func.func @transform_2(%arg0: i32, %arg1: i32) -> (i32, i32, i32) {
    %c0_i32 = arith.constant 0 : i32
    %c0_i32_0 = arith.constant 0 : i32
    return %arg0, %arg1, %c0_i32 : i32, i32, i32
  }
  func.func @transform_3(%arg0: i32, %arg1: i32) -> (i32, i32, i32, i32) {
    %c0_i32 = arith.constant 0 : i32
    %c0_i32_0 = arith.constant 0 : i32
    %c0_i32_1 = arith.constant 0 : i32
    return %arg0, %arg1, %c0_i32, %c0_i32_0 : i32, i32, i32, i32
  }
  func.func @transform_4(%arg0: i32, %arg1: i32) -> (i32, i32, i32, i32) {
    %c0_i32 = arith.constant 0 : i32
    %c0_i32_0 = arith.constant 0 : i32
    %c0_i32_1 = arith.constant 0 : i32
    return %arg0, %arg1, %c0_i32, %c0_i32_0 : i32, i32, i32, i32
  }
}

</mosaic_0001>

<bundles_post_ra>
// kernel: upconv2d_forward.1
= control target key start
LH: loop header
LB: loop body
LE: loop exit
PB: predicated region body
PF: predicated region fallthrough
CT: control target
= control target key end

     0   :  { %s1473_s15 = smov 0   ;;  %s1475_s16 = smov 0   ;;  %s1574_s0 = inlined_call_operand.vmem [shape: f32[2,4,256], index: 0, kind: input, shape index: {}]   ;;  %s1575_s1 = inlined_call_operand.vmem [shape: f32[4,128], index: 1, kind: input, shape index: {}]   ;;  %s1576_s2 = inlined_call_operand.vmem [shape: bf16[2,256,128], index: 2, kind: output, shape index: {0}]   ;;  %s1577_s3 = inlined_call_operand.vmem [shape: f32[2,1,8,128], index: 3, kind: output, shape index: {1}]   ;;  %s1578_s4 = inlined_call_operand.vmem [shape: f32[2,1,8,128], index: 4, kind: output, shape index: {2}]  }
   0x1   :  { %s1477_s17 = smov 0  }
   0x2 LB: > { %s27_s18 = sadd.s32 1, %s1442_s16  ;;  %p1110_p0 = scmp.ge.s32.totalorder %s1446_s17, 1  ;;  %s1446_s17 = sphi %s1477_s17, %s15_s17   ;;  %s1442_s16 = sphi %s1475_s16, %s1580_s16   ;;  %s1438_s15 = sphi %s1473_s15, %s1579_s15  }
   0x3   : > { %p29_p1 = scmp.ge.s32.totalorder %s27_s18, 2  ;;  %p192_p2 = scmp.lt.s32.totalorder %s1446_s17, 3 }
   0x5   : > { %s1582_s18 = smov (%p29_p1, %s27_s18), 0  ;;  %p193_p3 = pnand %p1110_p0, %p192_p2 }
   0x6   : > { %p241_p4 = scmp.lt.s32.totalorder (!%p193_p3), %s1438_s15, 1 }
   0x7   : > { %196 = sbr.rel (%p193_p3) target bundleno = 479 (0x1df), region = 28 }
   0xc   : > { %s1584_s15 = smov (!%p241_p4, %s1438_s15), 1  ;;  %v275_v0 = vld [vmem:[%s1575_s1] sm:$0xf]  ;;  %vm440_vm0 = vcmask 1043456   ;;  %vm343_vm1 = vcmask 31744  }
   0xd   : > { %s1494_s19 = sshll.u32 %s1584_s15, 3  ;;  %1346 = vmatprep.subr.msk.mxu0 %vm440_vm0, %v275_v0  ;;  %1396 = vmatprep.subr.msk.mxu1 %vm440_vm0, %v275_v0  ;;  %s1185_s25 = sshll.u32 %s1584_s15, 7 }
   0xe   : > { %s248_s24 = scalar_lea.vmem %s1574_s0, %s1494_s19  ;;  %1347 = vmatpush3.msk.msra.mxu0 %vm440_vm0, %v275_v0  ;;  %1397 = vmatpush3.msk.msra.mxu1 %vm440_vm0, %v275_v0  ;;  %s1539_s28 = scalar_lea.vmem %s1576_s2, %s1185_s25 }
   0xf   : > { %v274_v1 = vld [vmem:[%s248_s24] sm:$0xff]  ;;  %s266_s5 = scalar_lea.vmem %s1577_s3, %s1494_s19  ;;  %s273_s8 = scalar_lea.vmem %s1578_s4, %s1494_s19 }
  0x10   : > { %279 = vxpose.xlu0.b32.start.end [1/1] (short) %v274_v1, 128  ;;  %v277_v2 = vcombine.high %v274_v1, %v274_v1 }
  0x4d   : > { %311 = vxpose.xlu0.b32.start.end [1/1] (short) %v277_v2, 128 }
  0x8c   : > { %v295_v3 = vpop.trf.xlu0 }
  0x8d   : > { %1348 = vmatprep.mubr.msk.f32.mxu0 %vm343_vm1, %v295_v3 }
  0x90   : > { %v296_v4 = vpop.trf.xlu0 }
  0x91   : > { %1349 = vmatmul.mubr.msk.f32.vlgmr.msra.gmra.mxu0 %vm343_vm1, %v296_v4 }
  0x94   : > { %v297_v5 = vpop.trf.xlu0 }
  0x95   : > { %1351 = vmatprep.mubr.msk.f32.mxu0 %vm343_vm1, %v297_v5 }
  0x98   : > { %v298_v6 = vpop.trf.xlu0 }
  0x99   : > { %1352 = vmatmul.mubr.msk.f32.gmra.mxu0 %vm343_vm1, %v298_v6 }
  0x9c   : > { %v299_v7 = vpop.trf.xlu0 }
  0x9d   : > { %1354 = vmatprep.mubr.msk.f32.mxu0 %vm343_vm1, %v299_v7 }
  0xa0   : > { %v300_v8 = vpop.trf.xlu0 }
  0xa1   : > { %1355 = vmatmul.mubr.msk.f32.gmra.mxu0 %vm343_vm1, %v300_v8 }
  0xa4   : > { %v301_v9 = vpop.trf.xlu0 }
  0xa5   : > { %1357 = vmatprep.mubr.msk.f32.mxu0 %vm343_vm1, %v301_v9 }
  0xa8   : > { %v302_v10 = vpop.trf.xlu0 }
  0xa9   : > { %1358 = vmatmul.mubr.msk.f32.gmra.mxu0 %vm343_vm1, %v302_v10 }
  0xac   : > { %v303_v11 = vpop.trf.xlu0 }
  0xad   : > { %1360 = vmatprep.mubr.msk.f32.mxu0 %vm343_vm1, %v303_v11 }
  0xb0   : > { %v304_v12 = vpop.trf.xlu0 }
  0xb1   : > { %1361 = vmatmul.mubr.msk.f32.gmra.mxu0 %vm343_vm1, %v304_v12 }
  0xb4   : > { %v305_v13 = vpop.trf.xlu0 }
  0xb5   : > { %1363 = vmatprep.mubr.msk.f32.mxu0 %vm343_vm1, %v305_v13 }
  0xb8   : > { %v306_v14 = vpop.trf.xlu0 }
  0xb9   : > { %1364 = vmatmul.mubr.msk.f32.gmra.mxu0 %vm343_vm1, %v306_v14 }
  0xbc   : > { %v307_v15 = vpop.trf.xlu0 }
  0xbd   : > { %1366 = vmatprep.mubr.msk.f32.mxu0 %vm343_vm1, %v307_v15 }
  0xc0   : > { %v308_v16 = vpop.trf.xlu0 }
  0xc1   : > { %1367 = vmatmul.mubr.msk.f32.gmra.mxu0 %vm343_vm1, %v308_v16 }
  0xc4   : > { %v309_v17 = vpop.trf.xlu0 }
  0xc5   : > { %1369 = vmatprep.mubr.msk.f32.mxu0 %vm343_vm1, %v309_v17 }
  0xc8   : > { %v310_v18 = vpop.trf.xlu0 }
  0xc9   : > { %1370 = vmatmul.mubr.msk.f32.gmra.mxu0 %vm343_vm1, %v310_v18 }
  0xcc   : > { %v327_v19 = vpop.trf.xlu0 }
  0xcd   : > { %1372 = vmatprep.mubr.msk.f32.mxu1 %vm343_vm1, %v327_v19 }
  0xd0   : > { %v328_v20 = vpop.trf.xlu0 }
  0xd1   : > { %1373 = vmatmul.mubr.msk.f32.vlgmr.msra.gmra.mxu1 %vm343_vm1, %v328_v20 }
  0xd4   : > { %v329_v21 = vpop.trf.xlu0 }
  0xd5   : > { %1375 = vmatprep.mubr.msk.f32.mxu1 %vm343_vm1, %v329_v21 }
  0xd8   : > { %v330_v22 = vpop.trf.xlu0 }
  0xd9   : > { %1376 = vmatmul.mubr.msk.f32.gmra.mxu1 %vm343_vm1, %v330_v22 }
  0xdc   : > { %v331_v23 = vpop.trf.xlu0 }
  0xdd   : > { %1378 = vmatprep.mubr.msk.f32.mxu1 %vm343_vm1, %v331_v23 }
  0xe0   : > { %v332_v24 = vpop.trf.xlu0 }
  0xe1   : > { %1379 = vmatmul.mubr.msk.f32.gmra.mxu1 %vm343_vm1, %v332_v24 }
  0xe4   : > { %v333_v25 = vpop.trf.xlu0 }
  0xe5   : > { %1381 = vmatprep.mubr.msk.f32.mxu1 %vm343_vm1, %v333_v25 }
  0xe8   : > { %v334_v26 = vpop.trf.xlu0 }
  0xe9   : > { %1382 = vmatmul.mubr.msk.f32.gmra.mxu1 %vm343_vm1, %v334_v26 }
  0xec   : > { %v335_v27 = vpop.trf.xlu0 }
  0xed   : > { %1384 = vmatprep.mubr.msk.f32.mxu1 %vm343_vm1, %v335_v27 }
  0xf0   : > { %v336_v28 = vpop.trf.xlu0 }
  0xf1   : > { %1385 = vmatmul.mubr.msk.f32.gmra.mxu1 %vm343_vm1, %v336_v28 }
  0xf4   : > { %v337_v29 = vpop.trf.xlu0 }
  0xf5   : > { %1387 = vmatprep.mubr.msk.f32.mxu1 %vm343_vm1, %v337_v29 }
  0xf8   : > { %v338_v30 = vpop.trf.xlu0 }
  0xf9   : > { %1388 = vmatmul.mubr.msk.f32.gmra.mxu1 %vm343_vm1, %v338_v30 }
  0xfc   : > { %v339_v31 = vpop.trf.xlu0 }
  0xfd   : > { %1390 = vmatprep.mubr.msk.f32.mxu1 %vm343_vm1, %v339_v31 }
 0x100   : > { %v340_v32 = vpop.trf.xlu0 }
 0x101   : > { %1391 = vmatmul.mubr.msk.f32.gmra.mxu1 %vm343_vm1, %v340_v32 }
 0x104   : > { %v341_v33 = vpop.trf.xlu0 }
 0x105   : > { %1393 = vmatprep.mubr.msk.f32.mxu1 %vm343_vm1, %v341_v33 }
 0x108   : > { %v342_v34 = vpop.trf.xlu0 }
 0x109   : > { %1394 = vmatmul.mubr.msk.f32.gmra.mxu1 %vm343_vm1, %v342_v34 }
 0x151   : > { %v1350_v35 = vpop.f32.mrf.mxu0 }
 0x152   : > { %v867_v51 = vmul.f32 %v1350_v35, %v1350_v35 }
 0x153   : > { %v510_v36 = vpop.f32.mrf.mxu0 }
 0x154   : > { %v1221_v37 = vpack.c.bf16 %v1350_v35, %v510_v36  ;;  %v866_v49 = vmul.f32 %v510_v36, %v510_v36  ;;  %v829_v52 = vadd.f32 %v1350_v35, %v510_v36 }
 0x156   : > { %1222 = vst [vmem:[%s1539_s28] sm:$0xff] %v1221_v37   ;;  %v898_v54 = vadd.f32 %v867_v51, %v866_v49 }
 0x159   : > { %v1353_v38 = vpop.f32.mrf.mxu0 }
 0x15a   : > { %v869_v59 = vmul.f32 %v1353_v38, %v1353_v38 }
 0x15b   : > { %v520_v39 = vpop.f32.mrf.mxu0 }
 0x15c   : > { %v1226_v40 = vpack.c.bf16 %v1353_v38, %v520_v39  ;;  %v868_v53 = vmul.f32 %v520_v39, %v520_v39  ;;  %v830_v55 = vadd.f32 %v829_v52, %v520_v39 }
 0x15e   : > { %1298 = vst [vmem:[%s1539_s28 + $0x8] sm:$0xff] %v1226_v40   ;;  %v899_v57 = vadd.f32 %v898_v54, %v868_v53  ;;  %v831_v60 = vadd.f32 %v1353_v38, %v830_v55 }
 0x160   : > { %v900_v0 = vadd.f32 %v899_v57, %v869_v59 }
 0x161   : > { %v1356_v41 = vpop.f32.mrf.mxu0 }
 0x162   : > { %v871_v3 = vmul.f32 %v1356_v41, %v1356_v41 }
 0x163   : > { %v530_v42 = vpop.f32.mrf.mxu0 }
 0x164   : > { %v1231_v43 = vpack.c.bf16 %v1356_v41, %v530_v42  ;;  %v870_v61 = vmul.f32 %v530_v42, %v530_v42  ;;  %v832_v63 = vadd.f32 %v831_v60, %v530_v42 }
 0x166   : > { %1299 = vst [vmem:[%s1539_s28 + $0x10] sm:$0xff] %v1231_v43   ;;  %v901_v1 = vadd.f32 %v900_v0, %v870_v61  ;;  %v833_v4 = vadd.f32 %v1356_v41, %v832_v63 }
 0x168   : > { %v902_v8 = vadd.f32 %v901_v1, %v871_v3 }
 0x169   : > { %v1359_v44 = vpop.f32.mrf.mxu0 }
 0x16a   : > { %v873_v11 = vmul.f32 %v1359_v44, %v1359_v44 }
 0x16b   : > { %v540_v45 = vpop.f32.mrf.mxu0 }
 0x16c   : > { %v1236_v46 = vpack.c.bf16 %v1359_v44, %v540_v45  ;;  %v872_v5 = vmul.f32 %v540_v45, %v540_v45  ;;  %v834_v7 = vadd.f32 %v833_v4, %v540_v45 }
 0x16e   : > { %1300 = vst [vmem:[%s1539_s28 + $0x18] sm:$0xff] %v1236_v46   ;;  %v903_v10 = vadd.f32 %v902_v8, %v872_v5  ;;  %v835_v12 = vadd.f32 %v1359_v44, %v834_v7 }
 0x170   : > { %v904_v16 = vadd.f32 %v903_v10, %v873_v11 }
 0x171   : > { %v1362_v47 = vpop.f32.mrf.mxu0 }
 0x172   : > { %v875_v20 = vmul.f32 %v1362_v47, %v1362_v47 }
 0x173   : > { %v550_v48 = vpop.f32.mrf.mxu0 }
 0x174   : > { %v1241_v50 = vpack.c.bf16 %v1362_v47, %v550_v48  ;;  %v874_v13 = vmul.f32 %v550_v48, %v550_v48  ;;  %v836_v15 = vadd.f32 %v835_v12, %v550_v48 }
 0x176   : > { %1301 = vst [vmem:[%s1539_s28 + $0x20] sm:$0xff] %v1241_v50   ;;  %v905_v18 = vadd.f32 %v904_v16, %v874_v13  ;;  %v837_v21 = vadd.f32 %v1362_v47, %v836_v15 }
 0x178   : > { %v906_v24 = vadd.f32 %v905_v18, %v875_v20 }
 0x179   : > { %v1365_v56 = vpop.f32.mrf.mxu0 }
 0x17a   : > { %v877_v28 = vmul.f32 %v1365_v56, %v1365_v56 }
 0x17b   : > { %v560_v58 = vpop.f32.mrf.mxu0 }
 0x17c   : > { %v1246_v62 = vpack.c.bf16 %v1365_v56, %v560_v58  ;;  %v876_v22 = vmul.f32 %v560_v58, %v560_v58  ;;  %v838_v23 = vadd.f32 %v837_v21, %v560_v58 }
 0x17e   : > { %1302 = vst [vmem:[%s1539_s28 + $0x28] sm:$0xff] %v1246_v62   ;;  %v907_v26 = vadd.f32 %v906_v24, %v876_v22  ;;  %v839_v29 = vadd.f32 %v1365_v56, %v838_v23 }
 0x180   : > { %v908_v33 = vadd.f32 %v907_v26, %v877_v28 }
 0x181   : > { %v1368_v2 = vpop.f32.mrf.mxu0 }
 0x182   : > { %v879_v36 = vmul.f32 %v1368_v2, %v1368_v2 }
 0x183   : > { %v570_v6 = vpop.f32.mrf.mxu0 }
 0x184   : > { %v1251_v9 = vpack.c.bf16 %v1368_v2, %v570_v6  ;;  %v878_v30 = vmul.f32 %v570_v6, %v570_v6  ;;  %v840_v32 = vadd.f32 %v839_v29, %v570_v6 }
 0x186   : > { %1303 = vst [vmem:[%s1539_s28 + $0x30] sm:$0xff] %v1251_v9   ;;  %v909_v34 = vadd.f32 %v908_v33, %v878_v30  ;;  %v841_v37 = vadd.f32 %v1368_v2, %v840_v32 }
 0x188   : > { %v910_v41 = vadd.f32 %v909_v34, %v879_v36 }
 0x189   : > { %v1371_v14 = vpop.f32.mrf.mxu0 }
 0x18a   : > { %v881_v44 = vmul.f32 %v1371_v14, %v1371_v14 }
 0x18b   : > { %v580_v17 = vpop.f32.mrf.mxu0 }
 0x18c   : > { %v1256_v19 = vpack.c.bf16 %v1371_v14, %v580_v17  ;;  %v880_v38 = vmul.f32 %v580_v17, %v580_v17  ;;  %v842_v40 = vadd.f32 %v841_v37, %v580_v17 }
 0x18e   : > { %1304 = vst [vmem:[%s1539_s28 + $0x38] sm:$0xff] %v1256_v19   ;;  %v911_v43 = vadd.f32 %v910_v41, %v880_v38  ;;  %v843_v45 = vadd.f32 %v1371_v14, %v842_v40 }
 0x190   : > { %v912_v48 = vadd.f32 %v911_v43, %v881_v44 }
 0x191   : > { %v1374_v25 = vpop.f32.mrf.mxu1 }
 0x192   : > { %v883_v53 = vmul.f32 %v1374_v25, %v1374_v25 }
 0x193   : > { %v590_v27 = vpop.f32.mrf.mxu1 }
 0x194   : > { %v1261_v31 = vpack.c.bf16 %v1374_v25, %v590_v27  ;;  %v882_v46 = vmul.f32 %v590_v27, %v590_v27  ;;  %v844_v49 = vadd.f32 %v843_v45, %v590_v27 }
 0x196   : > { %1305 = vst [vmem:[%s1539_s28 + $0x40] sm:$0xff] %v1261_v31   ;;  %v913_v51 = vadd.f32 %v912_v48, %v882_v46  ;;  %v845_v54 = vadd.f32 %v1374_v25, %v844_v49 }
 0x198   : > { %v914_v57 = vadd.f32 %v913_v51, %v883_v53 }
 0x199   : > { %v1377_v35 = vpop.f32.mrf.mxu1 }
 0x19a   : > { %v885_v61 = vmul.f32 %v1377_v35, %v1377_v35 }
 0x19b   : > { %v600_v39 = vpop.f32.mrf.mxu1 }
 0x19c   : > { %v1266_v42 = vpack.c.bf16 %v1377_v35, %v600_v39  ;;  %v884_v55 = vmul.f32 %v600_v39, %v600_v39  ;;  %v846_v56 = vadd.f32 %v845_v54, %v600_v39 }
 0x19e   : > { %1306 = vst [vmem:[%s1539_s28 + $0x48] sm:$0xff] %v1266_v42   ;;  %v915_v59 = vadd.f32 %v914_v57, %v884_v55  ;;  %v847_v62 = vadd.f32 %v1377_v35, %v846_v56 }
 0x1a0   : > { %v916_v2 = vadd.f32 %v915_v59, %v885_v61 }
 0x1a1   : > { %v1380_v47 = vpop.f32.mrf.mxu1 }
 0x1a2   : > { %v887_v5 = vmul.f32 %v1380_v47, %v1380_v47 }
 0x1a3   : > { %v610_v50 = vpop.f32.mrf.mxu1 }
 0x1a4   : > { %v1271_v52 = vpack.c.bf16 %v1380_v47, %v610_v50  ;;  %v886_v63 = vmul.f32 %v610_v50, %v610_v50  ;;  %v848_v1 = vadd.f32 %v847_v62, %v610_v50 }
 0x1a6   : > { %1307 = vst [vmem:[%s1539_s28 + $0x50] sm:$0xff] %v1271_v52   ;;  %v917_v3 = vadd.f32 %v916_v2, %v886_v63  ;;  %v849_v6 = vadd.f32 %v1380_v47, %v848_v1 }
 0x1a8   : > { %v918_v10 = vadd.f32 %v917_v3, %v887_v5 }
 0x1a9   : > { %v1383_v58 = vpop.f32.mrf.mxu1 }
 0x1aa   : > { %v889_v13 = vmul.f32 %v1383_v58, %v1383_v58 }
 0x1ab   : > { %v620_v60 = vpop.f32.mrf.mxu1 }
 0x1ac   : > { %v1276_v0 = vpack.c.bf16 %v1383_v58, %v620_v60  ;;  %v888_v7 = vmul.f32 %v620_v60, %v620_v60  ;;  %v850_v9 = vadd.f32 %v849_v6, %v620_v60 }
 0x1ae   : > { %1308 = vst [vmem:[%s1539_s28 + $0x58] sm:$0xff] %v1276_v0   ;;  %v919_v12 = vadd.f32 %v918_v10, %v888_v7  ;;  %v851_v14 = vadd.f32 %v1383_v58, %v850_v9 }
 0x1b0   : > { %v920_v18 = vadd.f32 %v919_v12, %v889_v13 }
 0x1b1   : > { %v1386_v4 = vpop.f32.mrf.mxu1 }
 0x1b2   : > { %v891_v22 = vmul.f32 %v1386_v4, %v1386_v4 }
 0x1b3   : > { %v630_v8 = vpop.f32.mrf.mxu1 }
 0x1b4   : > { %v1281_v11 = vpack.c.bf16 %v1386_v4, %v630_v8  ;;  %v890_v15 = vmul.f32 %v630_v8, %v630_v8  ;;  %v852_v17 = vadd.f32 %v851_v14, %v630_v8 }
 0x1b6   : > { %1309 = vst [vmem:[%s1539_s28 + $0x60] sm:$0xff] %v1281_v11   ;;  %v921_v20 = vadd.f32 %v920_v18, %v890_v15  ;;  %v853_v23 = vadd.f32 %v1386_v4, %v852_v17 }
 0x1b8   : > { %v922_v26 = vadd.f32 %v921_v20, %v891_v22 }
 0x1b9   : > { %v1389_v16 = vpop.f32.mrf.mxu1 }
 0x1ba   : > { %v893_v30 = vmul.f32 %v1389_v16, %v1389_v16 }
 0x1bb   : > { %v640_v19 = vpop.f32.mrf.mxu1 }
 0x1bc   : > { %v1286_v21 = vpack.c.bf16 %v1389_v16, %v640_v19  ;;  %v892_v24 = vmul.f32 %v640_v19, %v640_v19  ;;  %v854_v25 = vadd.f32 %v853_v23, %v640_v19 }
 0x1be   : > { %1310 = vst [vmem:[%s1539_s28 + $0x68] sm:$0xff] %v1286_v21   ;;  %v923_v28 = vadd.f32 %v922_v26, %v892_v24  ;;  %v855_v32 = vadd.f32 %v1389_v16, %v854_v25 }
 0x1c0   : > { %v924_v35 = vadd.f32 %v923_v28, %v893_v30 }
 0x1c1   : > { %v1392_v27 = vpop.f32.mrf.mxu1 }
 0x1c2   : > { %v895_v38 = vmul.f32 %v1392_v27, %v1392_v27 }
 0x1c3   : > { %v650_v29 = vpop.f32.mrf.mxu1 }
 0x1c4   : > { %v1291_v31 = vpack.c.bf16 %v1392_v27, %v650_v29  ;;  %v894_v33 = vmul.f32 %v650_v29, %v650_v29  ;;  %v856_v34 = vadd.f32 %v855_v32, %v650_v29 }
 0x1c6   : > { %1311 = vst [vmem:[%s1539_s28 + $0x70] sm:$0xff] %v1291_v31   ;;  %v925_v36 = vadd.f32 %v924_v35, %v894_v33  ;;  %v857_v39 = vadd.f32 %v1392_v27, %v856_v34 }
 0x1c8   : > { %v926_v44 = vadd.f32 %v925_v36, %v895_v38 }
 0x1c9   : > { %v1395_v37 = vpop.f32.mrf.mxu1 }
 0x1ca   : > { %v897_v45 = vmul.f32 %v1395_v37, %v1395_v37 }
 0x1cb   : > { %v660_v40 = vpop.f32.mrf.mxu1 }
 0x1cc   : > { %v1296_v41 = vpack.c.bf16 %v1395_v37, %v660_v40  ;;  %v858_v42 = vadd.f32 %v857_v39, %v660_v40  ;;  %v896_v43 = vmul.f32 %v660_v40, %v660_v40 }
 0x1ce   : > { %1312 = vst [vmem:[%s1539_s28 + $0x78] sm:$0xff] %v1296_v41   ;;  %v859_v46 = vadd.f32 %v1395_v37, %v858_v42  ;;  %v927_v47 = vadd.f32 %v926_v44, %v896_v43 }
 0x1d0   : > { %v860_v48 = vrot.slane %v859_v46, 4  ;;  %v928_v49 = vadd.f32 %v927_v47, %v897_v45 }
 0x1d2   : > { %v861_v50 = vadd.f32 %v860_v48, %v859_v46  ;;  %v929_v51 = vrot.slane %v928_v49, 4 }
 0x1d4   : > { %v862_v52 = vrot.slane %v861_v50, 2  ;;  %v930_v53 = vadd.f32 %v929_v51, %v928_v49 }
 0x1d6   : > { %v863_v54 = vadd.f32 %v862_v52, %v861_v50  ;;  %v931_v55 = vrot.slane %v930_v53, 2 }
 0x1d8   : > { %v864_v56 = vrot.slane %v863_v54, 1  ;;  %v932_v57 = vadd.f32 %v931_v55, %v930_v53 }
 0x1da   : > { %v865_v58 = vadd.f32 %v864_v56, %v863_v54  ;;  %v933_v59 = vrot.slane %v932_v57, 1 }
 0x1dc   : > { %v934_v60 = vadd.f32 %v933_v59, %v932_v57  ;;  %935 = vst [vmem:[%s266_s5] sm:$0xff] %v865_v58 }
 0x1de   : > { %936 = vst [vmem:[%s273_s8] sm:$0xff] %v934_v60 }
 0x1df PF: > { %s15_s17 = sadd.s32 1, %s1446_s17   ;;  %s1579_s15 = smov %s1442_s16 }
 0x1e0   : > { %p12_p5 = scmp.ge.s32.totalorder %s15_s17, 4   ;;  %s1580_s16 = smov %s1582_s18 }
 0x1e2   :  { %14 = sbr.rel (!%p12_p5) target bundleno = 2 (0x2), region = 82 }

</bundles_post_ra>
